<compile_context>
chip_gen: v7x
topology: tpu7x:2x2x1
jax: 0.10.0
libtpu: 0.0.40
codegen_flags: <defaults>
</compile_context>

<pallas_src>
import jax
import jax.numpy as jnp
from jax.experimental import pallas as pl
from jax.experimental.pallas import tpu as pltpu


# ----------------------------------------------------------------------------
# Kernel A: Bahdanau attention + GRU cell (vocab-independent work, runs once).
# ----------------------------------------------------------------------------
def _attn_gru_kernel(
    emb_ref, enc_ref, h_ref,
    wah_ref, wae_ref, ba_ref, v_ref,
    wihe_ref, wihc_ref, whh_ref, bih_ref, bhh_ref,
    ctx_ref, hnew_ref,
):
    B, S, H = enc_ref.shape
    f32 = jnp.float32
    bf16 = jnp.bfloat16

    emb = emb_ref[...]                                    # (B, E) bf16
    enc = enc_ref[...]                                    # (B, S, H) f32
    h = h_ref[...]                                        # (B, H) f32
    h_bf = h.astype(bf16)

    # ---- attention: [h ; enc] @ W_attn split into two partial matmuls ----
    wh = jnp.dot(h_bf, wah_ref[...], preferred_element_type=f32) + ba_ref[...]   # (B, H)
    we = jnp.dot(enc.reshape(B * S, H).astype(bf16), wae_ref[...],
                 preferred_element_type=f32).reshape(B, S, H)
    energy = jnp.tanh(we + wh[:, None, :])                # (B, S, H)

    # width-1 "energy @ v" as VPU multiply + lane reduce; scores kept as (B, S)
    # so the softmax reductions are dense lane reductions.
    scores = jnp.sum(energy * v_ref[...][None, :, :], axis=-1)                    # (B, S)
    m = jnp.max(scores, axis=-1, keepdims=True)
    e = jnp.exp(scores - m)
    a = e / jnp.sum(e, axis=-1, keepdims=True)            # softmax over source positions

    # context_b = sum_s a[b,s] * enc[b,s,:]
    weighted = jnp.sum(a[:, :, None] * enc, axis=1)       # (B, H) f32
    ctx_bf = weighted.astype(bf16)

    # ---- GRU cell (PyTorch gate order r,z,n), packed gate columns (3H wide) ----
    gi = (jnp.dot(emb, wihe_ref[...], preferred_element_type=f32)
          + jnp.dot(ctx_bf, wihc_ref[...], preferred_element_type=f32)
          + bih_ref[...])                                 # (B, 3H)
    gh = (jnp.dot(h_bf, whh_ref[...], preferred_element_type=f32)
          + bhh_ref[...])                                 # (B, 3H)

    r = jax.nn.sigmoid(gi[:, 0:H] + gh[:, 0:H])
    z = jax.nn.sigmoid(gi[:, H:2 * H] + gh[:, H:2 * H])
    n = jnp.tanh(gi[:, 2 * H:3 * H] + r * gh[:, 2 * H:3 * H])
    h_new = (1.0 - z) * n + z * h                         # (B, H) f32

    ctx_ref[...] = ctx_bf
    hnew_ref[...] = h_new


# ----------------------------------------------------------------------------
# Kernel B: output projection, tiled over vocab (parallel grid -> 2 TCs on v7x).
# One packed weight DMA + one MXU matmul per vocab tile.
# ----------------------------------------------------------------------------
def _vocab_proj_kernel(x_ref, w_ref, b_ref, pred_ref):
    pred = (jnp.dot(x_ref[...], w_ref[...], preferred_element_type=jnp.float32)
            + b_ref[...])
    pred_ref[...] = pred.astype(pred_ref.dtype)


# ----------------------------------------------------------------------------
# Parameter preparation (do ONCE outside any decode loop).
# ----------------------------------------------------------------------------
def prepare_params(params):
    """Split W_attn / W_ih by input block (gate columns stay packed), keep W_out
    packed, and cast all matmul weights + embedding table to bf16."""
    bf16 = jnp.bfloat16
    f32 = jnp.float32
    E = params["embedding"].shape[1]
    H = params["w_hh"].shape[0]
    w_attn, w_ih = params["w_attn"], params["w_ih"]
    return {
        "emb_table": params["embedding"].astype(bf16),
        # attention: [h ; enc] @ W_attn -> h @ W_attn[:H] + enc @ W_attn[H:]
        "w_attn_h": w_attn[:H].astype(bf16),
        "w_attn_e": w_attn[H:].astype(bf16),
        "b_attn": params["b_attn"].astype(f32),
        "v_attn": params["v_attn"].reshape(1, H).astype(f32),
        # GRU: rows split by input block (emb / context); gate columns packed [r|z|n]
        "w_ih_e": w_ih[:E].astype(bf16),                  # (E, 3H)
        "w_ih_c": w_ih[E:].astype(bf16),                  # (H, 3H)
        "w_hh": params["w_hh"].astype(bf16),              # (H, 3H)
        "b_ih": params["b_ih"].astype(f32),               # (1, 3H)
        "b_hh": params["b_hh"].astype(f32),               # (1, 3H)
        # output projection: packed -> one DMA + one matmul per vocab tile
        "w_out": params["w_out"].astype(bf16),            # (E+2H, V)
        "b_out": params["b_out"].astype(f32),             # (1, V)
    }


# ----------------------------------------------------------------------------
# Wrapper.
# ----------------------------------------------------------------------------
def decoder_with_attention(inp, encoder_outputs, prev_hidden, split_params, *, tile_v=2048):
    """
    inp:              (B,) int32 token ids
    encoder_outputs:  (S, B, H) f32  -- torch layout
    prev_hidden:      (n_layers, B, H) f32 -- torch layout, layer -1 used
    split_params:     output of prepare_params()
    tile_v:           vocab tile (multiple of 128); sweep ~1024-4096 per generation
                      (cap ~1536-2048 on v7x's 64 MiB VMEM).
    Returns (prediction (B, V) f32, hidden (n_layers, B, H) f32).
    """
    sp = split_params
    B = inp.shape[0]
    S, _, H = encoder_outputs.shape
    E = sp["emb_table"].shape[1]
    K = E + 2 * H
    V = sp["w_out"].shape[1]

    TV = min(tile_v, V)
    if TV < V:
        TV = max(128, (TV // 128) * 128)                  # keep vocab tiles lane-aligned

    # glue: embedding gather (bf16 table) + last-layer hidden; dropout = identity.
    embedded = jnp.take(sp["emb_table"], inp, axis=0)     # (B, E) bf16
    h_last = prev_hidden[-1]                              # (B, H) f32
    # (B, S, H) layout for lane-dense attention scores; hoist out of a decode loop.
    enc_bsh = jnp.transpose(encoder_outputs, (1, 0, 2))

    full2 = lambda shape: pl.BlockSpec(shape, lambda i: (0, 0))
    full3 = lambda shape: pl.BlockSpec(shape, lambda i: (0, 0, 0))

    # ---- kernel A: attention + GRU (small, single invocation) ----
    ctx_bf, h_new = pl.pallas_call(
        _attn_gru_kernel,
        grid=(1,),
        in_specs=[
            full2((B, E)),                                # embedded
            full3((B, S, H)),                             # encoder outputs
            full2((B, H)),                                # h
            full2((H, H)), full2((H, H)),                 # w_attn_h, w_attn_e
            full2((1, H)), full2((1, H)),                 # b_attn, v_attn
            full2((E, 3 * H)), full2((H, 3 * H)),         # w_ih_e, w_ih_c
            full2((H, 3 * H)),                            # w_hh
            full2((1, 3 * H)), full2((1, 3 * H)),         # b_ih, b_hh
        ],
        out_specs=(full2((B, H)), full2((B, H))),
        out_shape=(
            jax.ShapeDtypeStruct((B, H), jnp.bfloat16),   # context (bf16 MXU operand)
            jax.ShapeDtypeStruct((B, H), jnp.float32),    # new hidden (f32, returned)
        ),
        compiler_params=pltpu.CompilerParams(
            dimension_semantics=("arbitrary",)),
    )(embedded, enc_bsh, h_last,
      sp["w_attn_h"], sp["w_attn_e"], sp["b_attn"], sp["v_attn"],
      sp["w_ih_e"], sp["w_ih_c"], sp["w_hh"], sp["b_ih"], sp["b_hh"])

    # tiny (B, E+2H) bf16 glue array for the projection (≈20 KB at real sizes).
    x_cat = jnp.concatenate([embedded, ctx_bf, h_new.astype(jnp.bfloat16)], axis=-1)

    # ---- kernel B: vocab-tiled projection; parallel grid (both TCs on v7x) ----
    # VMEM budget: up-to-triple-buffered W_out/b_out/pred tiles + resident x_cat.
    need = 3 * K * TV * 2 + 3 * (B + 1) * TV * 4 + 2 * B * K * 2
    vmem_limit = int(min(max(2 * need, 32 << 20), 64 << 20))

    pred = pl.pallas_call(
        _vocab_proj_kernel,
        grid=(pl.cdiv(V, TV),),
        in_specs=[
            pl.BlockSpec((B, K), lambda j: (0, 0)),       # x_cat (tiny, resident)
            pl.BlockSpec((K, TV), lambda j: (0, j)),      # packed W_out (vocab-tiled)
            pl.BlockSpec((1, TV), lambda j: (0, j)),      # b_out (vocab-tiled)
        ],
        out_specs=pl.BlockSpec((B, TV), lambda j: (0, j)),
        out_shape=jax.ShapeDtypeStruct((B, V), jnp.float32),
        compiler_params=pltpu.CompilerParams(
            dimension_semantics=("parallel",),
            vmem_limit_bytes=vmem_limit),
    )(x_cat, sp["w_out"], sp["b_out"])

    return pred, h_new[None, :, :]


# ----------------------------------------------------------------------------
# Pure-JAX f32 reference (mirrors the PyTorch module) and demo.
# ----------------------------------------------------------------------------
def _reference(inp, encoder_outputs, prev_hidden, params):
    embedded = jnp.take(params["embedding"], inp, axis=0)
    enc = jnp.transpose(encoder_outputs, (1, 0, 2))                # (B, S, H)
    h = prev_hidden[-1]
    B, S, H = enc.shape
    h_rep = jnp.broadcast_to(h[:, None, :], (B, S, H))
    energy = jnp.tanh(jnp.concatenate([h_rep, enc], -1) @ params["w_attn"]
                      + params["b_attn"])
    scores = (energy @ params["v_attn"])[..., 0]
    a = jax.nn.softmax(scores, axis=1)
    weighted = jnp.einsum("bs,bsh->bh", a, enc)
    x = jnp.concatenate([embedded, weighted], -1)
    gi = x @ params["w_ih"] + params["b_ih"]
    gh = h @ params["w_hh"] + params["b_hh"]
    r = jax.nn.sigmoid(gi[:, :H] + gh[:, :H])
    z = jax.nn.sigmoid(gi[:, H:2 * H] + gh[:, H:2 * H])
    n = jnp.tanh(gi[:, 2 * H:] + r * gh[:, 2 * H:])
    h_new = (1.0 - z) * n + z * h
    pred = jnp.concatenate([embedded, weighted, h_new], -1) @ params["w_out"] + params["b_out"]
    return pred, h_new[None]


def make_params(key, output_dim, emb_dim, hid_dim):
    ks = jax.random.split(key, 9)
    s = 0.1
    return {
        "embedding": s * jax.random.normal(ks[0], (output_dim, emb_dim), jnp.float32),
        # Bahdanau attention: attn = Linear(2*hid -> hid), v = Linear(hid -> 1, no bias)
        "w_attn": s * jax.random.normal(ks[1], (2 * hid_dim, hid_dim), jnp.float32),
        "b_attn": s * jax.random.normal(ks[2], (1, hid_dim), jnp.float32),
        "v_attn": s * jax.random.normal(ks[3], (hid_dim, 1), jnp.float32),
        # GRU (single layer), gates packed [r|z|n]
        "w_ih": s * jax.random.normal(ks[4], (emb_dim + hid_dim, 3 * hid_dim), jnp.float32),
        "b_ih": s * jax.random.normal(ks[5], (1, 3 * hid_dim), jnp.float32),
        "w_hh": s * jax.random.normal(ks[6], (hid_dim, 3 * hid_dim), jnp.float32),
        "b_hh": s * jax.random.normal(ks[7], (1, 3 * hid_dim), jnp.float32),
        # out = Linear(emb + 2*hid -> output_dim)
        "w_out": s * jax.random.normal(ks[8], (emb_dim + 2 * hid_dim, output_dim), jnp.float32),
        "b_out": jnp.zeros((1, output_dim), jnp.float32),
    }


if __name__ == "__main__":
    # Small shapes consistent with the module.  V=320 with tile_v=128 exercises
    # three vocab tiles including a partial (non-multiple-of-TV) last tile.
    OUTPUT_DIM, EMB_DIM, HID_DIM, N_LAYERS = 320, 32, 32, 1
    BATCH, SRC_LEN = 8, 8

    key = jax.random.PRNGKey(0)
    kp, ki, ke, kh = jax.random.split(key, 4)

    params = make_params(kp, OUTPUT_DIM, EMB_DIM, HID_DIM)
    split_params = prepare_params(params)   # hoisted out of any decode loop

    inp = jax.random.randint(ki, (BATCH,), 0, OUTPUT_DIM, dtype=jnp.int32)
    encoder_outputs = jax.random.normal(ke, (SRC_LEN, BATCH, HID_DIM), jnp.float32)
    prev_hidden = jax.random.normal(kh, (N_LAYERS, BATCH, HID_DIM), jnp.float32)

    pred, hidden = decoder_with_attention(inp, encoder_outputs, prev_hidden,
                                          split_params, tile_v=128)
    jax.block_until_ready((pred, hidden))

    pred_ref, hidden_ref = _reference(inp, encoder_outputs, prev_hidden, params)
    assert pred.shape == (BATCH, OUTPUT_DIM) and hidden.shape == (N_LAYERS, BATCH, HID_DIM)
    # bf16 matmul operands (f32 accumulation) -> looser tolerance than pure f32
    assert jnp.allclose(pred, pred_ref, atol=2e-2, rtol=2e-2)
    assert jnp.allclose(hidden, hidden_ref, atol=2e-2, rtol=2e-2)

    print("KERNEL_OK")
</pallas_src>

<mosaic_0001>
module attributes {stable_mosaic.version = 11 : i64} {
  func.func @_attn_gru_kernel(%arg0: i32, %arg1: memref<8x32xbf16, #tpu.memory_space<vmem>>, %arg2: memref<8x8x32xf32, #tpu.memory_space<vmem>>, %arg3: memref<8x32xf32, #tpu.memory_space<vmem>>, %arg4: memref<32x32xbf16, #tpu.memory_space<vmem>>, %arg5: memref<32x32xbf16, #tpu.memory_space<vmem>>, %arg6: memref<1x32xf32, #tpu.memory_space<vmem>>, %arg7: memref<1x32xf32, #tpu.memory_space<vmem>>, %arg8: memref<32x96xbf16, #tpu.memory_space<vmem>>, %arg9: memref<32x96xbf16, #tpu.memory_space<vmem>>, %arg10: memref<32x96xbf16, #tpu.memory_space<vmem>>, %arg11: memref<1x96xf32, #tpu.memory_space<vmem>>, %arg12: memref<1x96xf32, #tpu.memory_space<vmem>>, %arg13: memref<8x32xbf16, #tpu.memory_space<vmem>>, %arg14: memref<8x32xf32, #tpu.memory_space<vmem>>) attributes {dimension_semantics = [#tpu.dimension_semantics<arbitrary>], iteration_bounds = array<i64: 1>, scalar_prefetch = 0 : i64, scratch_operands = 0 : i64, tpu.core_type = #tpu.core_type<tc>, window_params = [{pipeline_mode = #tpu.pipeline_mode<synchronous>, transform_indices = @transform_0, window_bounds = array<i64: 8, 32>}, {pipeline_mode = #tpu.pipeline_mode<synchronous>, transform_indices = @transform_1, window_bounds = array<i64: 8, 8, 32>}, {pipeline_mode = #tpu.pipeline_mode<synchronous>, transform_indices = @transform_2, window_bounds = array<i64: 8, 32>}, {pipeline_mode = #tpu.pipeline_mode<synchronous>, transform_indices = @transform_3, window_bounds = array<i64: 32, 32>}, {pipeline_mode = #tpu.pipeline_mode<synchronous>, transform_indices = @transform_4, window_bounds = array<i64: 32, 32>}, {pipeline_mode = #tpu.pipeline_mode<synchronous>, transform_indices = @transform_5, window_bounds = array<i64: 1, 32>}, {pipeline_mode = #tpu.pipeline_mode<synchronous>, transform_indices = @transform_6, window_bounds = array<i64: 1, 32>}, {pipeline_mode = #tpu.pipeline_mode<synchronous>, transform_indices = @transform_7, window_bounds = array<i64: 32, 96>}, {pipeline_mode = #tpu.pipeline_mode<synchronous>, transform_indices = @transform_8, window_bounds = array<i64: 32, 96>}, {pipeline_mode = #tpu.pipeline_mode<synchronous>, transform_indices = @transform_9, window_bounds = array<i64: 32, 96>}, {pipeline_mode = #tpu.pipeline_mode<synchronous>, transform_indices = @transform_10, window_bounds = array<i64: 1, 96>}, {pipeline_mode = #tpu.pipeline_mode<synchronous>, transform_indices = @transform_11, window_bounds = array<i64: 1, 96>}, {pipeline_mode = #tpu.pipeline_mode<synchronous>, transform_indices = @transform_12, window_bounds = array<i64: 8, 32>}, {pipeline_mode = #tpu.pipeline_mode<synchronous>, transform_indices = @transform_13, window_bounds = array<i64: 8, 32>}]} {
    %c0 = arith.constant 0 : index
    %c0_0 = arith.constant 0 : index
    %0 = vector.load %arg1[%c0, %c0_0] : memref<8x32xbf16, #tpu.memory_space<vmem>>, vector<8x32xbf16>
    %c0_1 = arith.constant 0 : index
    %c0_2 = arith.constant 0 : index
    %c0_3 = arith.constant 0 : index
    %1 = vector.load %arg2[%c0_1, %c0_2, %c0_3] : memref<8x8x32xf32, #tpu.memory_space<vmem>>, vector<8x8x32xf32>
    %c0_4 = arith.constant 0 : index
    %c0_5 = arith.constant 0 : index
    %2 = vector.load %arg3[%c0_4, %c0_5] : memref<8x32xf32, #tpu.memory_space<vmem>>, vector<8x32xf32>
    %3 = arith.truncf %2 : vector<8x32xf32> to vector<8x32xbf16>
    %c0_6 = arith.constant 0 : index
    %c0_7 = arith.constant 0 : index
    %4 = vector.load %arg4[%c0_6, %c0_7] : memref<32x32xbf16, #tpu.memory_space<vmem>>, vector<32x32xbf16>
    %cst = arith.constant dense<0.000000e+00> : vector<8x32xf32>
    %5 = tpu.matmul %3, %4, %cst {dimension_numbers = #tpu.dot_dimension_numbers<[1], [0], [0], [1], [0, 0, 1, 1], [], []>} : vector<8x32xbf16>, vector<32x32xbf16>, vector<8x32xf32> -> vector<8x32xf32>
    %c0_8 = arith.constant 0 : index
    %c0_9 = arith.constant 0 : index
    %6 = vector.load %arg6[%c0_8, %c0_9] : memref<1x32xf32, #tpu.memory_space<vmem>>, vector<1x32xf32>
    %7 = vector.broadcast %6 : vector<1x32xf32> to vector<8x32xf32>
    %8 = arith.addf %5, %7 : vector<8x32xf32>
    %9 = vector.shape_cast %1 : vector<8x8x32xf32> to vector<64x32xf32>
    %10 = arith.truncf %9 : vector<64x32xf32> to vector<64x32xbf16>
    %c0_10 = arith.constant 0 : index
    %c0_11 = arith.constant 0 : index
    %11 = vector.load %arg5[%c0_10, %c0_11] : memref<32x32xbf16, #tpu.memory_space<vmem>>, vector<32x32xbf16>
    %cst_12 = arith.constant dense<0.000000e+00> : vector<64x32xf32>
    %12 = tpu.matmul %10, %11, %cst_12 {dimension_numbers = #tpu.dot_dimension_numbers<[1], [0], [0], [1], [0, 0, 1, 1], [], []>} : vector<64x32xbf16>, vector<32x32xbf16>, vector<64x32xf32> -> vector<64x32xf32>
    %13 = vector.shape_cast %12 : vector<64x32xf32> to vector<8x8x32xf32>
    %14 = vector.shape_cast %8 : vector<8x32xf32> to vector<8x1x32xf32>
    %15 = vector.broadcast %14 : vector<8x1x32xf32> to vector<8x8x32xf32>
    %16 = arith.addf %13, %15 : vector<8x8x32xf32>
    %17 = math.tanh %16 : vector<8x8x32xf32>
    %c0_13 = arith.constant 0 : index
    %c0_14 = arith.constant 0 : index
    %18 = vector.load %arg7[%c0_13, %c0_14] : memref<1x32xf32, #tpu.memory_space<vmem>>, vector<1x32xf32>
    %19 = vector.shape_cast %18 : vector<1x32xf32> to vector<1x1x32xf32>
    %20 = vector.broadcast %19 : vector<1x1x32xf32> to vector<8x8x32xf32>
    %21 = arith.mulf %17, %20 : vector<8x8x32xf32>
    %cst_15 = arith.constant dense<0.000000e+00> : vector<8x8xf32>
    %22 = vector.multi_reduction <add>, %21, %cst_15 [2] : vector<8x8x32xf32> to vector<8x8xf32>
    %cst_16 = arith.constant dense<0xFF800000> : vector<8xf32>
    %23 = vector.multi_reduction <maximumf>, %22, %cst_16 [1] : vector<8x8xf32> to vector<8xf32>
    %24 = vector.shape_cast %23 : vector<8xf32> to vector<8x1xf32>
    %25 = vector.broadcast %24 : vector<8x1xf32> to vector<8x8xf32>
    %26 = arith.subf %22, %25 : vector<8x8xf32>
    %27 = math.exp %26 : vector<8x8xf32>
    %cst_17 = arith.constant dense<0.000000e+00> : vector<8xf32>
    %28 = vector.multi_reduction <add>, %27, %cst_17 [1] : vector<8x8xf32> to vector<8xf32>
    %29 = vector.shape_cast %28 : vector<8xf32> to vector<8x1xf32>
    %30 = vector.broadcast %29 : vector<8x1xf32> to vector<8x8xf32>
    %31 = arith.divf %27, %30 : vector<8x8xf32>
    %32 = vector.shape_cast %31 : vector<8x8xf32> to vector<8x8x1xf32>
    %33 = vector.broadcast %32 : vector<8x8x1xf32> to vector<8x8x32xf32>
    %34 = arith.mulf %33, %1 : vector<8x8x32xf32>
    %cst_18 = arith.constant dense<0.000000e+00> : vector<8x32xf32>
    %35 = vector.multi_reduction <add>, %34, %cst_18 [1] : vector<8x8x32xf32> to vector<8x32xf32>
    %36 = arith.truncf %35 : vector<8x32xf32> to vector<8x32xbf16>
    %c0_19 = arith.constant 0 : index
    %c0_20 = arith.constant 0 : index
    %37 = vector.load %arg8[%c0_19, %c0_20] : memref<32x96xbf16, #tpu.memory_space<vmem>>, vector<32x96xbf16>
    %cst_21 = arith.constant dense<0.000000e+00> : vector<8x96xf32>
    %38 = tpu.matmul %0, %37, %cst_21 {dimension_numbers = #tpu.dot_dimension_numbers<[1], [0], [0], [1], [0, 0, 1, 1], [], []>} : vector<8x32xbf16>, vector<32x96xbf16>, vector<8x96xf32> -> vector<8x96xf32>
    %c0_22 = arith.constant 0 : index
    %c0_23 = arith.constant 0 : index
    %39 = vector.load %arg9[%c0_22, %c0_23] : memref<32x96xbf16, #tpu.memory_space<vmem>>, vector<32x96xbf16>
    %cst_24 = arith.constant dense<0.000000e+00> : vector<8x96xf32>
    %40 = tpu.matmul %36, %39, %cst_24 {dimension_numbers = #tpu.dot_dimension_numbers<[1], [0], [0], [1], [0, 0, 1, 1], [], []>} : vector<8x32xbf16>, vector<32x96xbf16>, vector<8x96xf32> -> vector<8x96xf32>
    %41 = arith.addf %38, %40 : vector<8x96xf32>
    %c0_25 = arith.constant 0 : index
    %c0_26 = arith.constant 0 : index
    %42 = vector.load %arg11[%c0_25, %c0_26] : memref<1x96xf32, #tpu.memory_space<vmem>>, vector<1x96xf32>
    %43 = vector.broadcast %42 : vector<1x96xf32> to vector<8x96xf32>
    %44 = arith.addf %41, %43 : vector<8x96xf32>
    %c0_27 = arith.constant 0 : index
    %c0_28 = arith.constant 0 : index
    %45 = vector.load %arg10[%c0_27, %c0_28] : memref<32x96xbf16, #tpu.memory_space<vmem>>, vector<32x96xbf16>
    %cst_29 = arith.constant dense<0.000000e+00> : vector<8x96xf32>
    %46 = tpu.matmul %3, %45, %cst_29 {dimension_numbers = #tpu.dot_dimension_numbers<[1], [0], [0], [1], [0, 0, 1, 1], [], []>} : vector<8x32xbf16>, vector<32x96xbf16>, vector<8x96xf32> -> vector<8x96xf32>
    %c0_30 = arith.constant 0 : index
    %c0_31 = arith.constant 0 : index
    %47 = vector.load %arg12[%c0_30, %c0_31] : memref<1x96xf32, #tpu.memory_space<vmem>>, vector<1x96xf32>
    %48 = vector.broadcast %47 : vector<1x96xf32> to vector<8x96xf32>
    %49 = arith.addf %46, %48 : vector<8x96xf32>
    %50 = vector.extract_strided_slice %44 {offsets = [0, 0], sizes = [8, 32], strides = [1, 1]} : vector<8x96xf32> to vector<8x32xf32>
    %51 = vector.extract_strided_slice %49 {offsets = [0, 0], sizes = [8, 32], strides = [1, 1]} : vector<8x96xf32> to vector<8x32xf32>
    %52 = arith.addf %50, %51 : vector<8x32xf32>
    %53 = arith.negf %52 : vector<8x32xf32>
    %54 = math.exp %53 : vector<8x32xf32>
    %cst_32 = arith.constant 1.000000e+00 : f32
    %55 = vector.broadcast %cst_32 : f32 to vector<8x32xf32>
    %56 = arith.addf %55, %54 : vector<8x32xf32>
    %57 = arith.divf %55, %56 : vector<8x32xf32>
    %58 = vector.extract_strided_slice %44 {offsets = [0, 32], sizes = [8, 32], strides = [1, 1]} : vector<8x96xf32> to vector<8x32xf32>
    %59 = vector.extract_strided_slice %49 {offsets = [0, 32], sizes = [8, 32], strides = [1, 1]} : vector<8x96xf32> to vector<8x32xf32>
    %60 = arith.addf %58, %59 : vector<8x32xf32>
    %61 = arith.negf %60 : vector<8x32xf32>
    %62 = math.exp %61 : vector<8x32xf32>
    %cst_33 = arith.constant 1.000000e+00 : f32
    %63 = vector.broadcast %cst_33 : f32 to vector<8x32xf32>
    %64 = arith.addf %63, %62 : vector<8x32xf32>
    %65 = arith.divf %63, %64 : vector<8x32xf32>
    %66 = vector.extract_strided_slice %44 {offsets = [0, 64], sizes = [8, 32], strides = [1, 1]} : vector<8x96xf32> to vector<8x32xf32>
    %67 = vector.extract_strided_slice %49 {offsets = [0, 64], sizes = [8, 32], strides = [1, 1]} : vector<8x96xf32> to vector<8x32xf32>
    %68 = arith.mulf %57, %67 : vector<8x32xf32>
    %69 = arith.addf %66, %68 : vector<8x32xf32>
    %70 = math.tanh %69 : vector<8x32xf32>
    %cst_34 = arith.constant 1.000000e+00 : f32
    %71 = vector.broadcast %cst_34 : f32 to vector<8x32xf32>
    %72 = arith.subf %71, %65 : vector<8x32xf32>
    %73 = arith.mulf %72, %70 : vector<8x32xf32>
    %74 = arith.mulf %65, %2 : vector<8x32xf32>
    %75 = arith.addf %73, %74 : vector<8x32xf32>
    %c0_35 = arith.constant 0 : index
    %c0_36 = arith.constant 0 : index
    %76 = vector.load %arg13[%c0_35, %c0_36] : memref<8x32xbf16, #tpu.memory_space<vmem>>, vector<8x32xbf16>
    tpu.vector_store %arg13[%c0_35, %c0_36], %36 {strides = array<i32>} : memref<8x32xbf16, #tpu.memory_space<vmem>>, vector<8x32xbf16>,
    %c0_37 = arith.constant 0 : index
    %c0_38 = arith.constant 0 : index
    %77 = vector.load %arg14[%c0_37, %c0_38] : memref<8x32xf32, #tpu.memory_space<vmem>>, vector<8x32xf32>
    tpu.vector_store %arg14[%c0_37, %c0_38], %75 {strides = array<i32>} : memref<8x32xf32, #tpu.memory_space<vmem>>, vector<8x32xf32>,
    return
  }
  func.func @transform_0(%arg0: i32) -> (i32, i32) {
    %c0_i32 = arith.constant 0 : i32
    %c0_i32_0 = arith.constant 0 : i32
    %c0_i32_1 = arith.constant 0 : i32
    return %c0_i32, %c0_i32_0 : i32, i32
  }
  func.func @transform_1(%arg0: i32) -> (i32, i32, i32) {
    %c0_i32 = arith.constant 0 : i32
    %c0_i32_0 = arith.constant 0 : i32
    %c0_i32_1 = arith.constant 0 : i32
    %c0_i32_2 = arith.constant 0 : i32
    return %c0_i32, %c0_i32_0, %c0_i32_1 : i32, i32, i32
  }
  func.func @transform_2(%arg0: i32) -> (i32, i32) {
    %c0_i32 = arith.constant 0 : i32
    %c0_i32_0 = arith.constant 0 : i32
    %c0_i32_1 = arith.constant 0 : i32
    return %c0_i32, %c0_i32_0 : i32, i32
  }
  func.func @transform_3(%arg0: i32) -> (i32, i32) {
    %c0_i32 = arith.constant 0 : i32
    %c0_i32_0 = arith.constant 0 : i32
    %c0_i32_1 = arith.constant 0 : i32
    return %c0_i32, %c0_i32_0 : i32, i32
  }
  func.func @transform_4(%arg0: i32) -> (i32, i32) {
    %c0_i32 = arith.constant 0 : i32
    %c0_i32_0 = arith.constant 0 : i32
    %c0_i32_1 = arith.constant 0 : i32
    return %c0_i32, %c0_i32_0 : i32, i32
  }
  func.func @transform_5(%arg0: i32) -> (i32, i32) {
    %c0_i32 = arith.constant 0 : i32
    %c0_i32_0 = arith.constant 0 : i32
    %c0_i32_1 = arith.constant 0 : i32
    return %c0_i32, %c0_i32_0 : i32, i32
  }
  func.func @transform_6(%arg0: i32) -> (i32, i32) {
    %c0_i32 = arith.constant 0 : i32
    %c0_i32_0 = arith.constant 0 : i32
    %c0_i32_1 = arith.constant 0 : i32
    return %c0_i32, %c0_i32_0 : i32, i32
  }
  func.func @transform_7(%arg0: i32) -> (i32, i32) {
    %c0_i32 = arith.constant 0 : i32
    %c0_i32_0 = arith.constant 0 : i32
    %c0_i32_1 = arith.constant 0 : i32
    return %c0_i32, %c0_i32_0 : i32, i32
  }
  func.func @transform_8(%arg0: i32) -> (i32, i32) {
    %c0_i32 = arith.constant 0 : i32
    %c0_i32_0 = arith.constant 0 : i32
    %c0_i32_1 = arith.constant 0 : i32
    return %c0_i32, %c0_i32_0 : i32, i32
  }
  func.func @transform_9(%arg0: i32) -> (i32, i32) {
    %c0_i32 = arith.constant 0 : i32
    %c0_i32_0 = arith.constant 0 : i32
    %c0_i32_1 = arith.constant 0 : i32
    return %c0_i32, %c0_i32_0 : i32, i32
  }
  func.func @transform_10(%arg0: i32) -> (i32, i32) {
    %c0_i32 = arith.constant 0 : i32
    %c0_i32_0 = arith.constant 0 : i32
    %c0_i32_1 = arith.constant 0 : i32
    return %c0_i32, %c0_i32_0 : i32, i32
  }
  func.func @transform_11(%arg0: i32) -> (i32, i32) {
    %c0_i32 = arith.constant 0 : i32
    %c0_i32_0 = arith.constant 0 : i32
    %c0_i32_1 = arith.constant 0 : i32
    return %c0_i32, %c0_i32_0 : i32, i32
  }
  func.func @transform_12(%arg0: i32) -> (i32, i32) {
    %c0_i32 = arith.constant 0 : i32
    %c0_i32_0 = arith.constant 0 : i32
    %c0_i32_1 = arith.constant 0 : i32
    return %c0_i32, %c0_i32_0 : i32, i32
  }
  func.func @transform_13(%arg0: i32) -> (i32, i32) {
    %c0_i32 = arith.constant 0 : i32
    %c0_i32_0 = arith.constant 0 : i32
    %c0_i32_1 = arith.constant 0 : i32
    return %c0_i32, %c0_i32_0 : i32, i32
  }
}

</mosaic_0001>

<bundles_post_ra>
// kernel: tpu_custom_call.1
= control target key start
LH: loop header
LB: loop body
LE: loop exit
PB: predicated region body
PF: predicated region fallthrough
CT: control target
= control target key end

     0   :  { %19 = vsyncpa [#allocation3], 0  ;;  %s1933_s0 = inlined_call_operand.hbm [shape: bf16[8,32], index: 0, kind: input, shape index: {}]   ;;  %s1934_s1 = inlined_call_operand.hbm [shape: f32[8,8,32], index: 1, kind: input, shape index: {}]   ;;  %s1935_s2 = inlined_call_operand.hbm [shape: f32[8,32], index: 2, kind: input, shape index: {}]   ;;  %s1936_s3 = inlined_call_operand.hbm [shape: bf16[32,32], index: 3, kind: input, shape index: {}]   ;;  %s1937_s4 = inlined_call_operand.hbm [shape: bf16[32,32], index: 4, kind: input, shape index: {}]   ;;  %s1938_s5 = inlined_call_operand.vmem [shape: f32[1,32], index: 5, kind: input, shape index: {}]   ;;  %s1939_s6 = inlined_call_operand.vmem [shape: f32[1,32], index: 6, kind: input, shape index: {}]   ;;  %s1940_s7 = inlined_call_operand.vmem [shape: bf16[32,96], index: 7, kind: input, shape index: {}]   ;;  %s1941_s8 = inlined_call_operand.hbm [shape: bf16[32,96], index: 8, kind: input, shape index: {}]   ;;  %s1942_s9 = inlined_call_operand.vmem [shape: bf16[32,96], index: 9, kind: input, shape index: {}]   ;;  %s1943_s10 = inlined_call_operand.vmem [shape: f32[1,96], index: 10, kind: input, shape index: {}]   ;;  %s1944_s11 = inlined_call_operand.vmem [shape: f32[1,96], index: 11, kind: input, shape index: {}]   ;;  %s1945_s12 = inlined_call_operand.hbm [shape: bf16[8,32], index: 12, kind: output, shape index: {0}]   ;;  %s1946_s13 = inlined_call_operand.hbm [shape: f32[8,32], index: 13, kind: output, shape index: {1}]  }
   0x1   :  { %20 = vsyncpa [#allocation6], 0 }
   0x2   :  { %21 = vsyncpa [#allocation9], 0 }
   0x3   :  { %22 = vsyncpa [#allocation12], 0 }
   0x4   :  { %23 = vsyncpa [#allocation4], 0 }
   0x5   :  { %24 = vsyncpa [#allocation15], 0  ;;  %s1494_s25 = smov [#allocation5]   ;;  %s1306_s29 = scalar_lea.hbm %s1934_s1, 1024 }
   0x6   :  { %s40_s26 = sshll.u32 %s1494_s25, 4  ;;  %p1307_p0 = scmp.ne.s32.totalorder %s1934_s1, %s1306_s29  ;;  %s41_s26 = int_to_ptr.vmem [resolvable:$true] %s40_s26 }
   0x7   :  { %p1310_p1 = scmp.lt.u32.totalorder %s1306_s29, %s1934_s1 }
   0x9   :  { %p1312_p2 = pnand %p1310_p1, %p1307_p0 }
   0xb   :  { %1315 = shalt.err (!%p1312_p2)
}
   0xc   :  { %s1316_s17 = scalar_lea.vmem %s41_s26, 1024  ;;  %p1321_p4 = scmp.lt.s32.totalorder %s41_s26, %s41_s26 }
   0xd   :  { %p1317_p3 = scmp.ne.s32.totalorder %s41_s26, %s1316_s17  ;;  %p1322_p5 = scmp.lt.s32.totalorder %s1316_s17, %s1316_s17 }
   0xf   :  { %p1323_p6 = por %p1322_p5, %p1321_p4 }
  0x11   :  { %p1324_p7 = pnand %p1323_p6, %p1317_p3 }
  0x13   :  { %1327 = shalt.err (!%p1324_p7)
}
  0x14   :  { %s1495_s18 = smov 128   ;;  %s1496_s19 = smov 8  }
  0x15   :  { %46 = dma.hbm_to_vmem [thread:$0]  %s1934_s1, 1024, %s41_s26, [#allocation6], %s1495_s18, %s1495_s18, %s1496_s19  }
  0x16   :  { %s1497_s22 = smov [#allocation8]   ;;  %s1328_s27 = scalar_lea.hbm %s1936_s3, 256 }
  0x17   :  { %s62_s23 = sshll.u32 %s1497_s22, 4  ;;  %p1329_p8 = scmp.ne.s32.totalorder %s1936_s3, %s1328_s27  ;;  %s63_s23 = int_to_ptr.vmem [resolvable:$true] %s62_s23 }
  0x18   :  { %p1332_p9 = scmp.lt.u32.totalorder %s1328_s27, %s1936_s3 }
  0x1a   :  { %p1334_p10 = pnand %p1332_p9, %p1329_p8 }
  0x1c   :  { %1337 = shalt.err (!%p1334_p10)
}
  0x1d   :  { %s1338_s15 = scalar_lea.vmem %s63_s23, 256  ;;  %p1343_p12 = scmp.lt.s32.totalorder %s63_s23, %s63_s23 }
  0x1e   :  { %p1339_p11 = scmp.ne.s32.totalorder %s63_s23, %s1338_s15  ;;  %p1344_p13 = scmp.lt.s32.totalorder %s1338_s15, %s1338_s15 }
  0x20   :  { %p1345_p0 = por %p1344_p13, %p1343_p12 }
  0x22   :  { %p1346_p1 = pnand %p1345_p0, %p1339_p11 }
  0x24   :  { %1349 = shalt.err (!%p1346_p1)
}
  0x25   :  { %s1498_s1 = smov 64   ;;  %s1499_s26 = smov 4  }
  0x26   :  { %68 = dma.hbm_to_vmem [thread:$0]  %s1936_s3, 256, %s63_s23, [#allocation9], %s1498_s1, %s1498_s1, %s1499_s26  }
  0x27   :  { %s1500_s18 = smov [#allocation2]   ;;  %s1501_s20 = smov [#allocation7]  }
  0x28   :  { %s31_s19 = sshll.u32 %s1500_s18, 4  ;;  %s53_s21 = sshll.u32 %s1501_s20, 4  ;;  %s32_s19 = int_to_ptr.vmem [resolvable:$true] %s31_s19  ;;  %s54_s21 = int_to_ptr.vmem [resolvable:$true] %s53_s21 }
  0x29   :  { %s1350_s25 = scalar_lea.hbm %s1933_s0, 64 }
  0x2a   :  { %p1351_p2 = scmp.ne.s32.totalorder %s1933_s0, %s1350_s25  ;;  %p1354_p3 = scmp.lt.u32.totalorder %s1350_s25, %s1933_s0 }
  0x2c   :  { %p1356_p4 = pnand %p1354_p3, %p1351_p2 }
  0x2e   :  { %1359 = shalt.err (!%p1356_p4)
}
  0x2f   :  { %s1360_s3 = scalar_lea.vmem %s32_s19, 64  ;;  %p1365_p6 = scmp.lt.s32.totalorder %s32_s19, %s32_s19 }
  0x30   :  { %p1361_p5 = scmp.ne.s32.totalorder %s32_s19, %s1360_s3  ;;  %p1366_p7 = scmp.lt.s32.totalorder %s1360_s3, %s1360_s3 }
  0x32   :  { %p1367_p8 = por %p1366_p7, %p1365_p6 }
  0x34   :  { %p1368_p9 = pnand %p1367_p8, %p1361_p5 }
  0x36   :  { %1371 = shalt.err (!%p1368_p9)
}
  0x37   :  { %34 = dma.hbm_to_vmem [thread:$0]  %s1933_s0, 64, %s32_s19, [#allocation3]  }
  0x38   :  { %s1372_s17 = scalar_lea.hbm %s1935_s2, 128 }
  0x39   :  { %p1373_p10 = scmp.ne.s32.totalorder %s1935_s2, %s1372_s17  ;;  %p1376_p11 = scmp.lt.u32.totalorder %s1372_s17, %s1935_s2 }
  0x3b   :  { %p1378_p12 = pnand %p1376_p11, %p1373_p10 }
  0x3d   :  { %1381 = shalt.err (!%p1378_p12)
}
  0x3e   :  { %s1382_s25 = scalar_lea.vmem %s54_s21, 128  ;;  %p1387_p0 = scmp.lt.s32.totalorder %s54_s21, %s54_s21 }
  0x3f   :  { %p1383_p13 = scmp.ne.s32.totalorder %s54_s21, %s1382_s25  ;;  %p1388_p1 = scmp.lt.s32.totalorder %s1382_s25, %s1382_s25 }
  0x41   :  { %p1389_p2 = por %p1388_p1, %p1387_p0 }
  0x43   :  { %p1390_p3 = pnand %p1389_p2, %p1383_p13 }
  0x45   :  { %1393 = shalt.err (!%p1390_p3)
}
  0x46   :  { %56 = dma.hbm_to_vmem [thread:$0]  %s1935_s2, 128, %s54_s21, [#allocation6]  }
  0x47   :  { %s1502_s27 = smov [#allocation10]   ;;  %s1503_s29 = smov [#allocation11]  }
  0x48   :  { %s74_s28 = sshll.u32 %s1502_s27, 4  ;;  %s92_s30 = sshll.u32 %s1503_s29, 4  ;;  %s75_s28 = int_to_ptr.vmem [resolvable:$true] %s74_s28  ;;  %s1633_s30 = int_to_ptr.vmem [resolvable:$true] %s92_s30 }
  0x49   :  { %s1394_s14 = scalar_lea.hbm %s1937_s4, 256 }
  0x4a   :  { %p1395_p4 = scmp.ne.s32.totalorder %s1937_s4, %s1394_s14  ;;  %p1398_p5 = scmp.lt.u32.totalorder %s1394_s14, %s1937_s4 }
  0x4c   :  { %p1400_p6 = pnand %p1398_p5, %p1395_p4 }
  0x4e   :  { %1403 = shalt.err (!%p1400_p6)
}
  0x4f   :  { %s1404_s2 = scalar_lea.vmem %s75_s28, 256  ;;  %p1409_p8 = scmp.lt.s32.totalorder %s75_s28, %s75_s28 }
  0x50   :  { %p1405_p7 = scmp.ne.s32.totalorder %s75_s28, %s1404_s2  ;;  %p1410_p9 = scmp.lt.s32.totalorder %s1404_s2, %s1404_s2 }
  0x52   :  { %p1411_p10 = por %p1410_p9, %p1409_p8 }
  0x54   :  { %p1412_p11 = pnand %p1411_p10, %p1405_p7 }
  0x56   :  { %1415 = shalt.err (!%p1412_p11)
}
  0x57   :  { %80 = dma.hbm_to_vmem [thread:$0]  %s1937_s4, 256, %s75_s28, [#allocation9], %s1498_s1, %s1498_s1, %s1499_s26  }
  0x58   :  { %s1416_s25 = scalar_lea.hbm %s1941_s8, 256 }
  0x59   :  { %p1417_p12 = scmp.ne.s32.totalorder %s1941_s8, %s1416_s25  ;;  %p1420_p13 = scmp.lt.u32.totalorder %s1416_s25, %s1941_s8 }
  0x5b   :  { %p1422_p0 = pnand %p1420_p13, %p1417_p12 }
  0x5d   :  { %1425 = shalt.err (!%p1422_p0)
}
  0x5e   :  { %s1426_s3 = scalar_lea.vmem %s1633_s30, 256  ;;  %p1431_p2 = scmp.lt.s32.totalorder %s1633_s30, %s1633_s30 }
  0x5f   :  { %p1427_p1 = scmp.ne.s32.totalorder %s1633_s30, %s1426_s3  ;;  %p1432_p3 = scmp.lt.s32.totalorder %s1426_s3, %s1426_s3 }
  0x61   :  { %p1433_p4 = por %p1432_p3, %p1431_p2 }
  0x63   :  { %p1434_p5 = pnand %p1433_p4, %p1427_p1 }
  0x65   :  { %1437 = shalt.err (!%p1434_p5)
}
  0x66   :  { %98 = dma.hbm_to_vmem [thread:$0]  %s1941_s8, 256, %s1633_s30, [#allocation12], %s1498_s1, %s1498_s1, %s1499_s26  }
  0x67   :  { %1482 = dma.done.wait [#allocation3], 64  }
  0x68   :  { %1483 = vsyncadd [#allocation3], 4294967232 }
  0x69   :  { %1484 = dma.done.wait [#allocation6], 1152  }
  0x6a   :  { %1485 = vsyncadd [#allocation6], 4294966144 }
  0x6b   :  { %1486 = dma.done.wait [#allocation9], 512  }
  0x6c   :  { %1487 = vsyncadd [#allocation9], 4294966784 }
  0x6d   :  { %1488 = dma.done.wait [#allocation12], 256  }
  0x6e   :  { %1489 = vsyncadd [#allocation12], 4294967040  ;;  %v1504_v0 = vmov 0.0   ;;  %vm1505_vm0 = vmmov 0   ;;  %v1242_v1 = vld [vmem:[#allocation8] sm:$0xff]   ;;  %v1243_v2 = vld [vmem:[#allocation10] sm:$0xff]   ;;  %v304_v21 = vlaneseq }
  0x6f   :  { %1178 = vmatprep.subr.bf16.mxu0 %v1504_v0  ;;  %1182 = vmatprep.mubr.msk.bf16.mxu0 %vm1505_vm0, %v1504_v0  ;;  %v1244_v3 = vld [vmem:[#allocation8 + $0x8] sm:$0xff]   ;;  %v1245_v4 = vld [vmem:[#allocation10 + $0x8] sm:$0xff]   ;;  %vm158_vm1 = vcmask 261120   ;;  %v1678_v7 = vld [vmem:[#allocation5 + $0x8] sm:$0xff]  ;;  %v1506_v19 = vmov 1966171168  }
  0x70   :  { %1179 = vmatpush3.bf16.msra.mxu0 %v1242_v1  ;;  %1186 = vmatprep.subr.bf16.mxu1 %v1243_v2  ;;  %v1674_v5 = vld [vmem:[#allocation7] sm:$0xff]  ;;  %v1686_v10 = vld [vmem:[#allocation5 + $0x10] sm:$0xff]  ;;  %v1688_v11 = vld [vmem:[#allocation5 + $0x18] sm:$0xff]  ;;  %v302_v20 = vunpack.c.l.s4 %v1506_v19  ;;  %v1717_v23 = vshrl.u32 %v304_v21, 7  ;;  %vm486_vm2 = vcmask 1041409   ;;  %vm488_vm3 = vcmask 1042434  }
  0x71   :  { %1180 = vmatprep.subr.bf16.mxu0 %v1504_v0  ;;  %1187 = vmatpush3.bf16.msra.mxu1 %v1243_v2  ;;  %v1676_v6 = vld [vmem:[#allocation5] sm:$0xff]  ;;  %v1682_v8 = vpack.c.bf16 %v1674_v5, %v1674_v5  ;;  %v1692_v13 = vld [vmem:[#allocation5 + $0x28] sm:$0xff]  ;;  %v203_v14 = vpack.c.bf16 %v1688_v11, %v1686_v10  ;;  %v1707_v16 = vld [vmem:[#allocation5 + $0x30] sm:$0xff]  ;;  %vm490_vm4 = vcmask 1043459   ;;  %vm492_vm5 = vcmask 1044484   ;;  %s1510_s22 = smov [#allocation13]  }
  0x72   :  { %1188 = vmatprep.subr.bf16.mxu1 %v1245_v4  ;;  %v202_v9 = vpack.c.bf16 %v1678_v7, %v1676_v6  ;;  %v1690_v12 = vld [vmem:[#allocation5 + $0x20] sm:$0xff]  ;;  %v1709_v17 = vld [vmem:[#allocation5 + $0x38] sm:$0xff]  ;;  %v303_v22 = vunpack.c.0.s8 %v302_v20  ;;  %v1724_v34 = vsub.s32 0, %v1717_v23  ;;  %vm494_vm6 = vcmask 1045509   ;;  %s1095_s24 = sshll.u32 %s1510_s22, 4  ;;  %s1096_s24 = int_to_ptr.vmem [resolvable:$true] %s1095_s24 }
  0x73   :  { %v204_v15 = vpack.c.bf16 %v1692_v13, %v1690_v12  ;;  %v205_v18 = vpack.c.bf16 %v1709_v17, %v1707_v16  ;;  %v1121_v24 = vld [vmem:[%s1938_s5] ss:$0 sm:$0xff]  ;;  %vm496_vm7 = vcmask 1046534   ;;  %vm498_vm8 = vcmask 1047559   ;;  %s1438_s25 = scalar_lea.vmem %s1096_s24, 64  ;;  %p1443_p7 = scmp.lt.s32.totalorder %s1096_s24, %s1096_s24 }
  0x74   :  { %1181 = vmatpush3.bf16.msra.mxu0 %v1244_v3  ;;  %1190 = vmatprep.mubr.msk.bf16.mxu1 %vm158_vm1, %v202_v9  ;;  %v306_v25 = vsub.s32 %v303_v22, %v1717_v23  ;;  %vm501_vm9 = vcmask 64512   ;;  %vm1082_vm10 = vcmask 257024   ;;  %p1439_p6 = scmp.ne.s32.totalorder %s1096_s24, %s1438_s25  ;;  %p1444_p8 = scmp.lt.s32.totalorder %s1438_s25, %s1438_s25 }
  0x75   :  { %1198 = vmatprep.subr.bf16.mxu0 %v1504_v0  ;;  %1189 = vmatpush3.bf16.msra.mxu1 %v1245_v4 }
  0x76   :  { %1214 = vmatprep.subr.bf16.mxu1 %v1504_v0  ;;  %p1445_p9 = por %p1444_p8, %p1443_p7 }
  0x77   :  { %1183 = vmatmul.mubr.msk.bf16.vlgmr.msra.gmra.mrb[0].mxu0 %vm158_vm1, %v1682_v8 }
  0x78   :  { %1202 = vmatprep.mubr.msk.bf16.mxu0 %vm1505_vm0, %v1504_v0  ;;  %1191 = vmatmul.mubr.msk.bf16.vlgmr.msra.gmra.mrb[0].mxu1 %vm158_vm1, %v203_v14  ;;  %v1131_v14 = vld [vmem:[%s1939_s6] ss:$0 sm:$0xff]  ;;  %p1446_p10 = pnand %p1445_p9, %p1439_p6 }
  0x79   :  { %1194 = vmatprep.mubr.msk.bf16.mxu1 %vm158_vm1, %v204_v15 }
  0x80   :  { %1195 = vmatmul.mubr.msk.bf16.gmra.mrb[4].mxu1 %vm158_vm1, %v205_v18 }
  0x81   :  { %1218 = vmatprep.mubr.msk.bf16.mxu1 %vm1505_vm0, %v1504_v0 }
 0x14a   :  { %v196_v26 = vpop.f32.mrb[0].mxu0 }
 0x14b   :  { %v197_v27 = vadd.f32 %v1121_v24, %v196_v26  ;;  %v1184_v28 = vpop.f32.mrb[1].mxu0  ;;  %v1192_v30 = vpop.f32.mrb[0].mxu1 }
 0x14c   :  { %v199_v29 = vpop.f32.mrb[2].mxu0  ;;  %v268_v35 = vpop.f32.mrb[1].mxu1 }
 0x14d   :  { %v300_v31 = vcombine.high %v197_v27, %v197_v27  ;;  %v307_v32 = vrot.slane %v197_v27, %v306_v25  ;;  %v1185_v33 = vpop.f32.mrb[3].mxu0  ;;  %v1193_v36 = vpop.f32.mrb[2].mxu1 }
 0x14e   :  { %v271_v40 = vpop.f32.mrb[3].mxu1 }
 0x14f   :  { %v314_v37 = vrot.slane %v300_v31, %v306_v25  ;;  %v315_v38 = vcombine.high %v307_v32, %v307_v32  ;;  %v323_v39 = vrot.slane %v307_v32, %v306_v25 }
 0x151   :  { %v316_v41 = vcombine.high %v314_v37, %v314_v37  ;;  %v345_v42 = vcombine.high %v323_v39, %v323_v39  ;;  %v352_v43 = vrot.slane %v323_v39, %v1724_v34  ;;  %v337_v44 = vrot.slane %v315_v38, %v306_v25 }
 0x152   :  { %v330_v45 = vrot.slane %v314_v37, %v306_v25 }
 0x153   :  { %v360_v46 = vrot.slane %v345_v42, %v1724_v34  ;;  %v389_v47 = vadd.f32 %v352_v43, %v268_v35  ;;  %v347_v48 = vcombine.high %v337_v44, %v337_v44  ;;  %v356_v49 = vrot.slane %v337_v44, %v1724_v34  ;;  %v1196_v50 = vpop.f32.mrb[4].mxu1 }
 0x154   :  { %v346_v51 = vcombine.high %v330_v45, %v330_v45  ;;  %v368_v52 = vrot.slane %v330_v45, %v1724_v34  ;;  %v344_v53 = vrot.slane %v316_v41, %v306_v25  ;;  %v284_v57 = vpop.f32.mrb[5].mxu1  ;;  %v453_v44 = vand.u32 127, %v304_v21 }
 0x155   :  { %v391_v54 = vadd.f32 %v1192_v30, %v360_v46  ;;  %1252 = vtanh.f32 %v389_v47  ;;  %v364_v55 = vrot.slane %v347_v48, %v1724_v34  ;;  %v390_v56 = vadd.f32 %v356_v49, %v271_v40  ;;  %v1197_v60 = vpop.f32.mrb[6].mxu1 }
 0x156   :  { %v376_v58 = vrot.slane %v346_v51, %v1724_v34  ;;  %v393_v59 = vadd.f32 %v368_v52, %v284_v57  ;;  %v348_v61 = vcombine.high %v344_v53, %v344_v53  ;;  %v372_v62 = vrot.slane %v344_v53, %v1724_v34  ;;  %v287_v1 = vpop.f32.mrb[7].mxu1 }
 0x157   :  { %1254 = vtanh.f32 %v391_v54  ;;  %v392_v63 = vadd.f32 %v1193_v36, %v364_v55  ;;  %v1747_v46 = vsub.s32 %v453_v44, %v1717_v23 }
 0x158   :  { %1256 = vtanh.f32 %v390_v56  ;;  %v395_v2 = vadd.f32 %v1196_v50, %v376_v58  ;;  %v380_v3 = vrot.slane %v348_v61, %v1724_v34  ;;  %v394_v4 = vadd.f32 %v372_v62, %v287_v1 }
 0x159   :  { %1258 = vtanh.f32 %v392_v63 }
 0x15a   :  { %v396_v9 = vadd.f32 %v1197_v60, %v380_v3  ;;  %1260 = vtanh.f32 %v393_v59 }
 0x15b   :  { %1262 = vtanh.f32 %v395_v2 }
 0x15c   :  { %1264 = vtanh.f32 %v394_v4 }
 0x15d   :  { %1266 = vtanh.f32 %v396_v9 }
 0x15f   :  { %v1253_v15 = vpop.eup %1252 }
 0x160   :  { %v412_v18 = vmul.f32 %v1253_v15, %v1131_v14  ;;  %v512_v15 = vsub.s32 1, %v1717_v23 }
 0x161   :  { %v1255_v19 = vpop.eup %1254 }
 0x162   :  { %v1257_v20 = vpop.eup %1256  ;;  %v420_v22 = vsel %vm158_vm1, %v412_v18, 0.0  ;;  %v414_v24 = vmul.f32 %v1255_v19, %v1131_v14  ;;  %v516_v18 = vsub.s32 2, %v1717_v23  ;;  %v520_v19 = vsub.s32 3, %v1717_v23 }
 0x163   :  { %v1259_v25 = vpop.eup %1258  ;;  %421 = vadd.xlane.f32.xlu0 %v420_v22  ;;  %v413_v26 = vmul.f32 %v1257_v20, %v1131_v14 }
 0x164   :  { %v426_v27 = vsel %vm158_vm1, %v414_v24, 0.0  ;;  %v415_v28 = vmul.f32 %v1259_v25, %v1131_v14  ;;  %v1261_v29 = vpop.eup %1260 }
 0x165   :  { %427 = vadd.xlane.f32.xlu1 %v426_v27  ;;  %v1263_v30 = vpop.eup %1262  ;;  %v423_v31 = vsel %vm158_vm1, %v413_v26, 0.0  ;;  %v416_v32 = vmul.f32 %v1261_v29, %v1131_v14  ;;  %v524_v26 = vsub.s32 4, %v1717_v23 }
 0x166   :  { %v1265_v33 = vpop.eup %1264  ;;  %v429_v35 = vsel %vm158_vm1, %v415_v28, 0.0  ;;  %v418_v39 = vmul.f32 %v1263_v30, %v1131_v14 }
 0x167   :  { %424 = vadd.xlane.f32.xlu0 %v423_v31  ;;  %v417_v36 = vmul.f32 %v1265_v33, %v1131_v14  ;;  %v1267_v37 = vpop.eup %1266  ;;  %v432_v38 = vsel %vm158_vm1, %v416_v32, 0.0  ;;  %v528_v33 = vsub.s32 5, %v1717_v23 }
 0x168   :  { %v419_v41 = vmul.f32 %v1267_v37, %v1131_v14  ;;  %v438_v42 = vsel %vm158_vm1, %v418_v39, 0.0  ;;  %v1507_v14 = vmov 0  }
 0x169   :  { %430 = vadd.xlane.f32.xlu1 %v429_v35  ;;  %v435_v40 = vsel %vm158_vm1, %v417_v36, 0.0  ;;  %1241 = vset.pattern.permute.xlu0 %v1507_v14 }
 0x16a   :  { %v441_v43 = vsel %vm158_vm1, %v419_v41, 0.0  ;;  %1240 = vset.pattern.permute.xlu1 %v1507_v14 }
 0x16b   :  { %433 = vadd.xlane.f32.xlu0 %v432_v38  ;;  %v532_v38 = vsub.s32 6, %v1717_v23 }
 0x16d   :  { %436 = vadd.xlane.f32.xlu1 %v435_v40 }
 0x16f   :  { %439 = vadd.xlane.f32.xlu0 %v438_v42  ;;  %v536_v42 = vsub.s32 7, %v1717_v23 }
 0x171   :  { %442 = vadd.xlane.f32.xlu1 %v441_v43 }
 0x1f0   :  { %v422_v45 = vpop.xlane.xlu0 %421 }
 0x1f1   :  { %v457_v49 = vrot.slane %v422_v45, %v1747_v46 }
 0x1f2   :  { %v428_v47 = vpop.xlane.xlu1 %427 }
 0x1f3   :  { %v465_v51 = vrot.slane %v428_v47, %v1747_v46 }
 0x1f4   :  { %v425_v48 = vpop.xlane.xlu0 %424 }
 0x1f5   :  { %v461_v50 = vrot.slane %v425_v48, %v1747_v46 }
 0x1f6   :  { %v431_v52 = vpop.xlane.xlu1 %430 }
 0x1f7   :  { %v487_v53 = vsel %vm486_vm2, %v461_v50, %v457_v49  ;;  %v469_v21 = vrot.slane %v431_v52, %v1747_v46 }
 0x1f8   :  { %v489_v54 = vsel %vm488_vm3, %v465_v51, %v487_v53  ;;  %v434_v55 = vpop.xlane.xlu0 %433 }
 0x1f9   :  { %v491_v56 = vsel %vm490_vm4, %v469_v21, %v489_v54  ;;  %v473_v57 = vrot.slane %v434_v55, %v1747_v46 }
 0x1fa   :  { %v437_v58 = vpop.xlane.xlu1 %436 }
 0x1fb   :  { %v493_v59 = vsel %vm492_vm5, %v473_v57, %v491_v56  ;;  %v477_v60 = vrot.slane %v437_v58, %v1747_v46 }
 0x1fc   :  { %v440_v61 = vpop.xlane.xlu0 %439 }
 0x1fd   :  { %v481_v62 = vrot.slane %v440_v61, %v1747_v46  ;;  %v495_v63 = vsel %vm494_vm6, %v477_v60, %v493_v59 }
 0x1fe   :  { %v443_v1 = vpop.xlane.xlu1 %442 }
 0x1ff   :  { %v485_v2 = vrot.slane %v443_v1, %v1747_v46  ;;  %v497_v3 = vsel %vm496_vm7, %v481_v62, %v495_v63 }
 0x201   :  { %v499_v4 = vsel %vm498_vm8, %v485_v2, %v497_v3 }
 0x202   :  { %v502_v9 = vsel %vm501_vm9, %v499_v4, -inf }
 0x203   :  { %503 = vmax.xlane.f32.xlu0 %v502_v9 }
 0x290   :  { %v504_v20 = vpop.xlane.xlu0 %503 }
 0x291   :  { %v509_v22 = vrot.slane %v504_v20, %v1724_v34  ;;  %v513_v24 = vrot.slane %v504_v20, %v512_v15  ;;  %v517_v25 = vrot.slane %v504_v20, %v516_v18  ;;  %v521_v27 = vrot.slane %v504_v20, %v520_v19 }
 0x292   :  { %v525_v35 = vrot.slane %v504_v20, %v524_v26  ;;  %v529_v39 = vrot.slane %v504_v20, %v528_v33  ;;  %v533_v43 = vrot.slane %v504_v20, %v532_v38  ;;  %v537_v49 = vrot.slane %v504_v20, %v536_v42 }
 0x293   :  { %v546_v28 = vsub.f32 %v422_v45, %v509_v22  ;;  %v547_v29 = vsub.f32 %v425_v48, %v513_v24  ;;  %v548_v30 = vsub.f32 %v428_v47, %v517_v25  ;;  %v549_v36 = vsub.f32 %v431_v52, %v521_v27 }
 0x294   :  { %v550_v40 = vsub.f32 %v434_v55, %v525_v35  ;;  %v551_v44 = vsub.f32 %v437_v58, %v529_v39  ;;  %v552_v50 = vsub.f32 %v440_v61, %v533_v43  ;;  %v553_v53 = vsub.f32 %v443_v1, %v537_v49 }
 0x295   :  { %v554_v31 = vmul.f32 1.442695, %v546_v28  ;;  %v556_v32 = vmul.f32 1.442695, %v547_v29  ;;  %v558_v37 = vmul.f32 1.442695, %v548_v30 }
 0x296   :  { %v560_v41 = vmul.f32 1.442695, %v549_v36  ;;  %v562_v45 = vmul.f32 1.442695, %v550_v40  ;;  %v564_v51 = vmul.f32 1.442695, %v551_v44 }
 0x297   :  { %1268 = vpow2.f32 %v554_v31  ;;  %v566_v21 = vmul.f32 1.442695, %v552_v50  ;;  %v568_v55 = vmul.f32 1.442695, %v553_v53  ;;  %v1246_v40 = vld [vmem:[%s1942_s9] sm:$0xff]  }
 0x298   :  { %1270 = vpow2.f32 %v556_v32  ;;  %1215 = vmatpush3.bf16.msra.mxu1 %v1246_v40 }
 0x299   :  { %1272 = vpow2.f32 %v558_v37  ;;  %1216 = vmatprep.subr.bf16.mxu1 %v1504_v0 }
 0x29a   :  { %1274 = vpow2.f32 %v560_v41  ;;  %v1247_v41 = vld [vmem:[%s1942_s9 + $0x8] sm:$0xff]  }
 0x29b   :  { %1276 = vpow2.f32 %v562_v45 }
 0x29c   :  { %1278 = vpow2.f32 %v564_v51  ;;  %1217 = vmatpush3.bf16.msra.mxu1 %v1247_v41 }
 0x29d   :  { %1280 = vpow2.f32 %v566_v21 }
 0x29e   :  { %1282 = vpow2.f32 %v568_v55 }
 0x29f   :  { %1219 = vmatmul.mubr.msk.bf16.vlgmr.msra.gmra.mrb[8].mxu1 %vm158_vm1, %v1682_v8 }
 0x2a1   :  { %v1785_v47 = vpop.eup %1268 }
 0x2a2   :  { %v1787_v48 = vpop.eup %1270  ;;  %579 = vperm.xlu1 %1240, %v1785_v47  }
 0x2a3   :  { %582 = vperm.xlu0 %1241, %v1787_v48   ;;  %v1793_v52 = vpop.eup %1272 }
 0x2a4   :  { %v1796_v54 = vpop.eup %1274 }
 0x2a5   :  { %v1799_v56 = vpop.eup %1276 }
 0x2a6   :  { %585 = vperm.xlu1 %1240, %v1793_v52   ;;  %v1802_v57 = vpop.eup %1278 }
 0x2a7   :  { %v1805_v58 = vpop.eup %1280 }
 0x2a8   :  { %v1808_v59 = vpop.eup %1282 }
 0x2aa   :  { %588 = vperm.xlu1 %1240, %v1796_v54  }
 0x2ae   :  { %591 = vperm.xlu1 %1240, %v1799_v56  }
 0x2b2   :  { %594 = vperm.xlu1 %1240, %v1802_v57  }
 0x2b6   :  { %597 = vperm.xlu1 %1240, %v1805_v58  }
 0x2ba   :  { %600 = vperm.xlu1 %1240, %v1808_v59  }
 0x321   :  { %v580_v60 = vpop.permute.xlu1 %579 }
 0x322   :  { %v583_v1 = vpop.permute.xlu0 %582  ;;  %v605_v4 = vrot.slane %v580_v60, %v1747_v46 }
 0x323   :  { %v609_v3 = vrot.slane %v583_v1, %v1747_v46 }
 0x325   :  { %v586_v61 = vpop.permute.xlu1 %585  ;;  %v634_v24 = vsel %vm486_vm2, %v609_v3, %v605_v4 }
 0x326   :  { %v613_v9 = vrot.slane %v586_v61, %v1747_v46 }
 0x328   :  { %v635_v27 = vsel %vm488_vm3, %v613_v9, %v634_v24 }
 0x329   :  { %v589_v62 = vpop.permute.xlu1 %588 }
 0x32a   :  { %v617_v14 = vrot.slane %v589_v62, %v1747_v46 }
 0x32c   :  { %v636_v29 = vsel %vm490_vm4, %v617_v14, %v635_v27 }
 0x32d   :  { %v592_v63 = vpop.permute.xlu1 %591 }
 0x32e   :  { %v621_v20 = vrot.slane %v592_v63, %v1747_v46 }
 0x330   :  { %v637_v30 = vsel %vm492_vm5, %v621_v20, %v636_v29 }
 0x331   :  { %v595_v2 = vpop.permute.xlu1 %594 }
 0x332   :  { %v625_v25 = vrot.slane %v595_v2, %v1747_v46 }
 0x334   :  { %v638_v32 = vsel %vm494_vm6, %v625_v25, %v637_v30 }
 0x335   :  { %v598_v22 = vpop.permute.xlu1 %597 }
 0x336   :  { %v629_v28 = vrot.slane %v598_v22, %v1747_v46 }
 0x338   :  { %v639_v36 = vsel %vm496_vm7, %v629_v28, %v638_v32 }
 0x339   :  { %v601_v31 = vpop.permute.xlu1 %600 }
 0x33a   :  { %v633_v35 = vrot.slane %v601_v31, %v1747_v46 }
 0x33c   :  { %v640_v37 = vsel %vm498_vm8, %v633_v35, %v639_v36 }
 0x33d   :  { %v642_v39 = vsel %vm501_vm9, %v640_v37, 0.0 }
 0x33e   :  { %643 = vadd.xlane.f32.xlu1 %v642_v39 }
 0x3cb   :  { %v644_v46 = vpop.xlane.xlu1 %643 }
 0x3cc   :  { %v649_v43 = vrot.slane %v644_v46, %v1724_v34  ;;  %v653_v44 = vrot.slane %v644_v46, %v512_v15  ;;  %v657_v45 = vrot.slane %v644_v46, %v516_v18  ;;  %v661_v49 = vrot.slane %v644_v46, %v520_v19 }
 0x3cd   :  { %v665_v8 = vrot.slane %v644_v46, %v524_v26  ;;  %v669_v15 = vrot.slane %v644_v46, %v528_v33  ;;  %v673_v19 = vrot.slane %v644_v46, %v532_v38  ;;  %v677_v26 = vrot.slane %v644_v46, %v536_v42  ;;  %v1248_v42 = vld [vmem:[#allocation11] sm:$0xff]  }
 0x3ce   :  { %1284 = vrcp.f32 %v649_v43  ;;  %1199 = vmatpush3.bf16.msra.mxu0 %v1248_v42 }
 0x3cf   :  { %1286 = vrcp.f32 %v653_v44  ;;  %1200 = vmatprep.subr.bf16.mxu0 %v1504_v0 }
 0x3d0   :  { %1288 = vrcp.f32 %v657_v45 }
 0x3d1   :  { %1290 = vrcp.f32 %v661_v49 }
 0x3d2   :  { %1292 = vrcp.f32 %v665_v8 }
 0x3d3   :  { %1294 = vrcp.f32 %v669_v15 }
 0x3d4   :  { %1296 = vrcp.f32 %v673_v19 }
 0x3d5   :  { %1298 = vrcp.f32 %v677_v26 }
 0x3d8   :  { %v1285_v50 = vpop.eup %1284 }
 0x3d9   :  { %v687_v51 = vmul.f32 %v1285_v50, %v1785_v47  ;;  %v1287_v34 = vpop.eup %1286 }
 0x3da   :  { %v689_v53 = vmul.f32 %v1287_v34, %v1787_v48  ;;  %v1289_v18 = vpop.eup %1288 }
 0x3db   :  { %704 = vperm.xlu0 %1241, %v687_v51   ;;  %v691_v21 = vmul.f32 %v1289_v18, %v1793_v52  ;;  %v1291_v55 = vpop.eup %1290 }
 0x3dc   :  { %v693_v47 = vmul.f32 %v1291_v55, %v1796_v54  ;;  %v1293_v60 = vpop.eup %1292  ;;  %v1249_v54 = vld [vmem:[#allocation11 + $0x8] sm:$0xff]  }
 0x3dd   :  { %v695_v33 = vmul.f32 %v1293_v60, %v1799_v56  ;;  %v1295_v48 = vpop.eup %1294  ;;  %1201 = vmatpush3.bf16.msra.mxu0 %v1249_v54  ;;  %v1139_v56 = vld [vmem:[%s1944_s11] ss:$0 sm:$0xff] }
 0x3de   :  { %v697_v61 = vmul.f32 %v1295_v48, %v1802_v57  ;;  %v1297_v38 = vpop.eup %1296  ;;  %1206 = vmatprep.subr.bf16.mxu0 %v1504_v0  ;;  %v1021_v57 = vpop.f32.mrb[8].mxu1 }
 0x3df   :  { %709 = vperm.xlu0 %1241, %v689_v53   ;;  %v699_v52 = vmul.f32 %v1297_v38, %v1805_v58  ;;  %v1299_v62 = vpop.eup %1298  ;;  %v1864_v63 = vadd.f32 %v1139_v56, %v1021_v57  ;;  %v1220_v58 = vpop.f32.mrb[9].mxu1 }
 0x3e0   :  { %v701_v23 = vmul.f32 %v1299_v62, %v1808_v59  ;;  %v1024_v1 = vpop.f32.mrb[10].mxu1 }
 0x3e1   :  { %v1221_v2 = vpop.f32.mrb[11].mxu1  ;;  %1035 = vrot.lane.b32.xlu1 %v1864_v63, %s1498_s1 }
 0x3e3   :  { %714 = vperm.xlu0 %1241, %v691_v21  }
 0x3e7   :  { %719 = vperm.xlu0 %1241, %v693_v47  }
 0x3eb   :  { %724 = vperm.xlu0 %1241, %v695_v33  }
 0x3ef   :  { %729 = vperm.xlu0 %1241, %v697_v61  }
 0x3f3   :  { %734 = vperm.xlu0 %1241, %v699_v52  }
 0x3f7   :  { %739 = vperm.xlu0 %1241, %v701_v23  }
 0x45a   :  { %v705_v59 = vpop.permute.xlu0 %704 }
 0x45b   :  { %v742_v4 = vmul.f32 %v705_v59, %v1676_v6 }
 0x45d   :  { %v750_v22 = vsel %vm158_vm1, %v742_v4, 0.0 }
 0x45e   :  { %v710_v3 = vpop.permute.xlu0 %709  ;;  %v751_v28 = vrot.slane %v750_v22, 4 }
 0x45f   :  { %v743_v9 = vmul.f32 %v710_v3, %v1678_v7 }
 0x460   :  { %v752_v7 = vadd.f32 %v751_v28, %v750_v22 }
 0x461   :  { %v757_v14 = vsel %vm158_vm1, %v743_v9, 0.0 }
 0x462   :  { %v715_v20 = vpop.permute.xlu0 %714  ;;  %v758_v25 = vrot.slane %v757_v14, 4  ;;  %v753_v43 = vrot.slane %v752_v7, 2 }
 0x463   :  { %v744_v24 = vmul.f32 %v715_v20, %v1686_v10 }
 0x464   :  { %v759_v32 = vadd.f32 %v758_v25, %v757_v14  ;;  %v754_v15 = vadd.f32 %v753_v43, %v752_v7 }
 0x465   :  { %v764_v27 = vsel %vm158_vm1, %v744_v24, 0.0 }
 0x466   :  { %v765_v29 = vrot.slane %v764_v27, 4  ;;  %v720_v30 = vpop.permute.xlu0 %719  ;;  %v760_v40 = vrot.slane %v759_v32, 2  ;;  %v755_v48 = vrot.slane %v754_v15, 1 }
 0x467   :  { %v745_v31 = vmul.f32 %v720_v30, %v1688_v11 }
 0x468   :  { %v766_v35 = vadd.f32 %v765_v29, %v764_v27  ;;  %v761_v50 = vadd.f32 %v760_v40, %v759_v32  ;;  %v756_v58 = vadd.f32 %v755_v48, %v754_v15  ;;  %v1250_v15 = vld [vmem:[%s1940_s7] sm:$0xff]  }
 0x469   :  { %v771_v6 = vsel %vm158_vm1, %v745_v31, 0.0 }
 0x46a   :  { %v772_v36 = vrot.slane %v771_v6, 4  ;;  %v725_v37 = vpop.permute.xlu0 %724  ;;  %v767_v10 = vrot.slane %v766_v35, 2  ;;  %v762_v55 = vrot.slane %v761_v50, 1  ;;  %v806_v25 = vpack.c.bf16 %v756_v58, %v756_v58 }
 0x46b   :  { %v746_v39 = vmul.f32 %v725_v37, %v1690_v12 }
 0x46c   :  { %v773_v41 = vadd.f32 %v772_v36, %v771_v6  ;;  %v768_v51 = vadd.f32 %v767_v10, %v766_v35  ;;  %v763_v42 = vadd.f32 %v762_v55, %v761_v50  ;;  %v830_v7 = vunpack.c.l.b16 %v806_v25 }
 0x46d   :  { %v778_v46 = vsel %vm158_vm1, %v746_v39, 0.0 }
 0x46e   :  { %v774_v44 = vrot.slane %v773_v41, 2  ;;  %v779_v45 = vrot.slane %v778_v46, 4  ;;  %v730_v49 = vpop.permute.xlu0 %729  ;;  %v769_v47 = vrot.slane %v768_v51, 1  ;;  %v807_v9 = vpack.c.bf16 %v763_v42, %v763_v42  ;;  %v1036_v42 = vpop.permute.xlu1 %1035 }
 0x46f   :  { %v747_v11 = vmul.f32 %v730_v49, %v1692_v13 }
 0x470   :  { %v780_v8 = vadd.f32 %v779_v45, %v778_v46  ;;  %v775_v53 = vadd.f32 %v774_v44, %v773_v41  ;;  %v770_v56 = vadd.f32 %v769_v47, %v768_v51  ;;  %v831_v30 = vunpack.c.l.b16 %v807_v9 }
 0x471   :  { %v785_v34 = vsel %vm158_vm1, %v747_v11, 0.0 }
 0x472   :  { %v781_v18 = vrot.slane %v780_v8, 2  ;;  %v735_v12 = vpop.permute.xlu0 %734  ;;  %v786_v19 = vrot.slane %v785_v34, 4  ;;  %v776_v13 = vrot.slane %v775_v53, 1  ;;  %v808_v22 = vpack.c.bf16 %v770_v56, %v770_v56 }
 0x473   :  { %v748_v21 = vmul.f32 %v735_v12, %v1707_v16  ;;  %v838_v41 = vsel %vm486_vm2, %v831_v30, %v830_v7  ;;  %v124_v12 = vld [vmem:[#allocation2] sm:$0xf] }
 0x474   :  { %v782_v26 = vadd.f32 %v781_v18, %v780_v8  ;;  %v787_v60 = vadd.f32 %v786_v19, %v785_v34  ;;  %v777_v1 = vadd.f32 %v776_v13, %v775_v53  ;;  %v832_v6 = vunpack.c.l.b16 %v808_v22  ;;  %v1251_v18 = vld [vmem:[%s1940_s7 + $0x8] sm:$0xff]   ;;  %s1508_s7 = smov 96  }
 0x475   :  { %v792_v33 = vsel %vm158_vm1, %v748_v21, 0.0 }
 0x476   :  { %v793_v61 = vrot.slane %v792_v33, 4  ;;  %v740_v38 = vpop.permute.xlu0 %739  ;;  %v783_v52 = vrot.slane %v782_v26, 1  ;;  %v788_v62 = vrot.slane %v787_v60, 2  ;;  %v809_v27 = vpack.c.bf16 %v777_v1, %v777_v1 }
 0x477   :  { %v749_v23 = vmul.f32 %v740_v38, %v1709_v17  ;;  %v839_v43 = vsel %vm488_vm3, %v832_v6, %v838_v41 }
 0x478   :  { %v794_v54 = vadd.f32 %v793_v61, %v792_v33  ;;  %v789_v57 = vadd.f32 %v788_v62, %v787_v60  ;;  %v784_v3 = vadd.f32 %v783_v52, %v782_v26  ;;  %v833_v36 = vunpack.c.l.b16 %v809_v27  ;;  %v1138_v60 = vld [vmem:[%s1943_s10] ss:$0 sm:$0xff]  ;;  %s1509_s10 = smov 32  }
 0x479   :  { %v799_v16 = vsel %vm158_vm1, %v749_v23, 0.0 }
 0x47a   :  { %v795_v2 = vrot.slane %v794_v54, 2  ;;  %v800_v59 = vrot.slane %v799_v16, 4  ;;  %v790_v4 = vrot.slane %v789_v57, 1  ;;  %v810_v29 = vpack.c.bf16 %v784_v3, %v784_v3 }
 0x47b   :  { %v840_v45 = vsel %vm490_vm4, %v833_v36, %v839_v43 }
 0x47c   :  { %v796_v14 = vadd.f32 %v795_v2, %v794_v54  ;;  %v801_v20 = vadd.f32 %v800_v59, %v799_v16  ;;  %v791_v24 = vadd.f32 %v790_v4, %v789_v57  ;;  %v834_v40 = vunpack.c.l.b16 %v810_v29 }
 0x47e   :  { %v797_v17 = vrot.slane %v796_v14, 1  ;;  %v802_v28 = vrot.slane %v801_v20, 2  ;;  %v811_v31 = vpack.c.bf16 %v791_v24, %v791_v24  ;;  %v841_v11 = vsel %vm492_vm5, %v834_v40, %v840_v45 }
 0x480   :  { %v798_v32 = vadd.f32 %v797_v17, %v796_v14  ;;  %v803_v35 = vadd.f32 %v802_v28, %v801_v20  ;;  %v835_v10 = vunpack.c.l.b16 %v811_v31 }
 0x482   :  { %v812_v37 = vpack.c.bf16 %v798_v32, %v798_v32  ;;  %v804_v39 = vrot.slane %v803_v35, 1  ;;  %v842_v50 = vsel %vm494_vm6, %v835_v10, %v841_v11 }
 0x484   :  { %v805_v46 = vadd.f32 %v804_v39, %v803_v35  ;;  %v836_v44 = vunpack.c.l.b16 %v812_v37 }
 0x486   :  { %v813_v49 = vpack.c.bf16 %v805_v46, %v805_v46  ;;  %v843_v51 = vsel %vm496_vm7, %v836_v44, %v842_v50 }
 0x488   :  { %v837_v8 = vunpack.c.l.b16 %v813_v49 }
 0x48a   :  { %v844_v34 = vsel %vm498_vm8, %v837_v8, %v843_v51 }
 0x48b   :  { %v845_v53 = vpack.c.b16 %v844_v34, %v844_v34 }
 0x48d   :  { %1203 = vmatmul.mubr.msk.bf16.vlgmr.msra.gmra.mrb[4].mxu0 %vm158_vm1, %v845_v53  ;;  %1083 = vst.msk [vmem:[#allocation13] sm:$0xf] %vm1082_vm10, %v845_v53 }
 0x48e   :  { %1207 = vmatpush3.bf16.msra.mxu0 %v1250_v15  ;;  %1210 = vmatprep.mubr.msk.bf16.mxu0 %vm1505_vm0, %v1504_v0 }
 0x48f   :  { %1208 = vmatprep.subr.bf16.mxu0 %v1504_v0 }
 0x492   :  { %1209 = vmatpush3.bf16.msra.mxu0 %v1251_v18 }
 0x495   :  { %1211 = vmatmul.mubr.msk.bf16.vlgmr.msra.gmra.mrb[8].mxu0 %vm158_vm1, %v124_v12 }
 0x560   :  { %v895_v19 = vpop.f32.mrb[4].mxu0 }
 0x561   :  { %v1204_v21 = vpop.f32.mrb[5].mxu0 }
 0x562   :  { %v898_v55 = vpop.f32.mrb[6].mxu0 }
 0x563   :  { %v1205_v26 = vpop.f32.mrb[7].mxu0 }
 0x568   :  { %v950_v47 = vpop.f32.mrb[8].mxu0 }
 0x569   :  { %v951_v33 = vadd.f32 %v950_v47, %v895_v19  ;;  %v1212_v48 = vpop.f32.mrb[9].mxu0 }
 0x56a   :  { %v953_v13 = vpop.f32.mrb[10].mxu0 }
 0x56b   :  { %v963_v61 = vadd.f32 %v1138_v60, %v951_v33  ;;  %v1213_v38 = vpop.f32.mrb[11].mxu0 }
 0x56d   :  { %v1027_v0 = vadd.f32 %v1864_v63, %v963_v61 }
 0x56f   :  { %v1143_v52 = vmul.f32 -1.442695, %v1027_v0 }
 0x571   :  { %1300 = vpow2.f32 %v1143_v52 }
 0x57b   :  { %v1301_v62 = vpop.eup %1300 }
 0x57c   :  { %v1031_v23 = vadd.f32 1.0, %v1301_v62 }
 0x57e   :  { %1302 = vrcp.f32 %v1031_v23 }
 0x588   :  { %v1303_v54 = vpop.eup %1302 }
 0x589   :  { %v1038_v56 = vmul.f32 %v1303_v54, %v1036_v42 }
 0x58b   :  { %1040 = vrot.lane.b32.xlu0 %v1038_v56, %s1498_s1 }
 0x5fd   :  { %v1041_v57 = vpop.permute.xlu0 %1040 }
 0x5fe   :  { %v1043_v16 = vadd.f32 %v1041_v57, %v963_v61 }
 0x600   :  { %1304 = vtanh.f32 %v1043_v16 }
 0x60a   :  { %v1305_v58 = vpop.eup %1304 }
 0x60b   :  { %1047 = vrot.lane.b32.xlu0 %v1305_v58, %s1508_s7 }
 0x60f   :  { %1052 = vrot.lane.b32.xlu0 %v1674_v5, %s1509_s10 }
 0x610   :  { %1449 = shalt.err (!%p1446_p10)
}
 0x611   :  { %s1450_s19 = scalar_lea.hbm %s1945_s12, 64 }
 0x612   :  { %p1451_p11 = scmp.ne.s32.totalorder %s1945_s12, %s1450_s19  ;;  %p1454_p12 = scmp.lt.u32.totalorder %s1450_s19, %s1945_s12 }
 0x614   :  { %p1456_p13 = pnand %p1454_p12, %p1451_p11 }
 0x616   :  { %1459 = shalt.err (!%p1456_p13)
}
 0x617   :  { %1098 = dma.vmem_to_hbm [thread:$0]  %s1096_s24, 64, %s1945_s12, [#allocation4]   ;;  %v1045_v63 = vsub.f32 1.0, %v1303_v54 }
 0x618   :  { %s1511_s26 = smov [#allocation14]  }
 0x619   :  { %s1105_s5 = sshll.u32 %s1511_s26, 4  ;;  %s1106_s5 = int_to_ptr.vmem [resolvable:$true] %s1105_s5 }
 0x61a   :  { %s1460_s30 = scalar_lea.vmem %s1106_s5, 128  ;;  %p1465_p1 = scmp.lt.s32.totalorder %s1106_s5, %s1106_s5 }
 0x61b   :  { %p1461_p0 = scmp.ne.s32.totalorder %s1106_s5, %s1460_s30  ;;  %p1466_p2 = scmp.lt.s32.totalorder %s1460_s30, %s1460_s30 }
 0x61d   :  { %p1467_p3 = por %p1466_p2, %p1465_p1 }
 0x61f   :  { %p1468_p4 = pnand %p1467_p3, %p1461_p0 }
 0x67d   :  { %v1048_v5 = vpop.permute.xlu0 %1047 }
 0x67e   :  { %v1050_v2 = vmul.f32 %v1048_v5, %v1045_v63 }
 0x681   :  { %v1053_v1 = vpop.permute.xlu0 %1052 }
 0x682   :  { %v1055_v59 = vmul.f32 %v1303_v54, %v1053_v1 }
 0x684   :  { %v1056_v3 = vadd.f32 %v1055_v59, %v1050_v2 }
 0x686   :  { %1085 = vrot.lane.b32.xlu0 %v1056_v3, %s1508_s7 }
 0x6f8   :  { %v1086_v4 = vpop.permute.xlu0 %1085 }
 0x6f9   :  { %1088 = vst.msk [vmem:[#allocation14] sm:$0xff] %vm158_vm1, %v1086_v4 }
 0x6fa   :  { %1471 = shalt.err (!%p1468_p4)
}
 0x6fb   :  { %s1472_s23 = scalar_lea.hbm %s1946_s13, 128 }
 0x6fc   :  { %p1473_p5 = scmp.ne.s32.totalorder %s1946_s13, %s1472_s23  ;;  %p1476_p6 = scmp.lt.u32.totalorder %s1472_s23, %s1946_s13 }
 0x6fe   :  { %p1478_p7 = pnand %p1476_p6, %p1473_p5 }
 0x700   :  { %1481 = shalt.err (!%p1478_p7)
}
 0x701   :  { %1108 = dma.vmem_to_hbm [thread:$0]  %s1106_s5, 128, %s1946_s13, [#allocation15]  }
 0x702   :  { %1490 = dma.done.wait [#allocation4], 64  }
 0x703   :  { %1491 = vsyncadd [#allocation4], 4294967232 }
 0x704   :  { %1492 = dma.done.wait [#allocation15], 128  }
 0x705   :  { %1493 = vsyncadd [#allocation15], 4294967168 }
 0x706   :  { %1115 = vsyncpa [#allocation3], 1 }
 0x707   :  { %1116 = vsyncpa [#allocation6], 1 }
 0x708   :  { %1117 = vsyncpa [#allocation9], 1 }
 0x709   :  { %1118 = vsyncpa [#allocation12], 1 }
 0x70a   :  { %1119 = vsyncpa [#allocation4], 1 }
 0x70b   :  { %1120 = vsyncpa [#allocation15], 1 }

</bundles_post_ra>
